<compile_context>
chip_gen: v7x
topology: tpu7x:2x2x1
jax: 0.10.0
libtpu: 0.0.40
codegen_flags: <defaults>
</compile_context>

<pallas_src>
import functools
import math

import jax
import jax.numpy as jnp
from jax import lax
from jax.experimental import pallas as pl
from jax.experimental.pallas import tpu as pltpu

LANES = 128            # vreg lane width
FOLD = 8               # f32 vreg sublane count -> (8,128) accumulator
CHUNK = 64             # rows per in-kernel accumulation step (mult. of 8/16/32)
TILE_BYTES = 4 << 20   # 4 MiB input tile; 2x-buffered (8 MiB) fits all gens


def _accumulate_rows(x_ref, o_ref, n_rows):
    """o_ref += sum over the first n_rows of x_ref[0]**2, folded to (8,128) f32.

    Register-resident chunked accumulation: each CHUNK-row slab is loaded,
    cast to f32, squared and folded into a single (8,128) vreg carried through
    the loop, so no tile-sized temporaries are materialized (no spills).
    """
    full_chunks, rem = divmod(n_rows, CHUNK)

    def chunk_fold(start, nr):
        x = x_ref[0, pl.ds(start, nr), :].astype(jnp.float32)   # cast in-kernel
        sq = x * x
        return sq.reshape(nr // FOLD, FOLD, LANES).sum(axis=0)  # VPU-only fold

    acc = jnp.zeros((FOLD, LANES), jnp.float32)
    if full_chunks > 0:
        def body(c, a):
            start = pl.multiple_of(c * CHUNK, CHUNK)
            return a + chunk_fold(start, CHUNK)

        acc = lax.fori_loop(0, full_chunks, body, acc,
                            unroll=min(full_chunks, 8))
    if rem:  # rem is a static multiple of FOLD (dtype-aligned in the wrapper)
        acc = acc + chunk_fold(full_chunks * CHUNK, rem)
    o_ref[...] += acc[None, None]


def _sumsq_kernel(x_ref, o_ref, *, tile_rows, last_rows, num_tiles):
    s = pl.program_id(1)                 # row-tile split (fills v7x's 2nd core)
    t = pl.program_id(2)                 # row tile within the split (reduction)
    tps = pl.num_programs(2)
    gt = s * tps + t                     # global row-tile index

    @pl.when(t == 0)
    def _():
        o_ref[...] = jnp.zeros_like(o_ref)

    if last_rows == tile_rows:
        # Even division: one mask-free static plan for every tile.
        _accumulate_rows(x_ref, o_ref, tile_rows)
    else:
        @pl.when(gt != num_tiles - 1)
        def _():
            _accumulate_rows(x_ref, o_ref, tile_rows)

        @pl.when(gt == num_tiles - 1)
        def _():
            # Last tile is shorter; its row count is a *static* int, so the
            # shorter chunk plan simply never touches rows past the valid data
            # — no iota/compare/where masking and no reliance on OOB contents.
            _accumulate_rows(x_ref, o_ref, last_rows)


def _per_sample_sumsq(grad_interp):
    """sum(grad**2) over all non-batch dims, Pallas-accelerated."""
    b = grad_interp.shape[0]
    f = math.prod(grad_interp.shape[1:])
    g2 = grad_interp.reshape(b, f)

    itemsize = jnp.dtype(grad_interp.dtype).itemsize
    pack = {4: 8, 2: 16, 1: 32}.get(itemsize, 8)   # sublane packing per dtype
    rows = f // LANES
    rows_k = (rows // pack) * pack                 # rows handled by the kernel

    if f % LANES != 0 or rows_k == 0:
        # Lane-ragged or tiny feature dim: a single fused XLA square+reduce is
        # already ~HBM-roofline and avoids materializing a sliced copy of the
        # bulk gradient as the Pallas custom-call operand.
        g32 = g2.astype(jnp.float32)
        return jnp.sum(g32 * g32, axis=1)

    gk = g2.reshape(b, rows, LANES)   # pure view (f % 128 == 0) — no HBM copy

    max_tile_rows = max(CHUNK, (TILE_BYTES // (LANES * itemsize)) // CHUNK * CHUNK)
    tile_rows = min(max_tile_rows, rows_k)         # multiple of `pack`
    num_tiles = pl.cdiv(rows_k, tile_rows)
    last_rows = rows_k - (num_tiles - 1) * tile_rows

    # v7x has 2 TensorCores: when the batch alone can't fill them, expose the
    # row tiles through a second parallel axis (harmless on v5e/v6e).
    splits = 2 if num_tiles % 2 == 0 else 1
    tps = num_tiles // splits

    def in_index_map(i, s, t):
        return (i, s * tps + t, 0)

    def out_index_map(i, s, t):
        return (i, s, 0, 0)

    out = pl.pallas_call(
        functools.partial(_sumsq_kernel, tile_rows=tile_rows,
                          last_rows=last_rows, num_tiles=num_tiles),
        out_shape=jax.ShapeDtypeStruct((b, splits, FOLD, LANES), jnp.float32),
        grid_spec=pltpu.PrefetchScalarGridSpec(
            num_scalar_prefetch=0,
            grid=(b, splits, tps),
            in_specs=[pl.BlockSpec((1, tile_rows, LANES), in_index_map)],
            out_specs=pl.BlockSpec((1, 1, FOLD, LANES), out_index_map),
        ),
        compiler_params=pltpu.CompilerParams(
            dimension_semantics=("parallel", "parallel", "arbitrary"),
        ),
        cost_estimate=pl.CostEstimate(
            flops=2 * b * rows_k * LANES,
            transcendentals=0,
            bytes_accessed=b * rows_k * LANES * itemsize
                           + b * splits * FOLD * LANES * 4,
        ),
    )(gk)

    sumsq = jnp.sum(out, axis=(1, 2, 3))   # tiny (B,splits,8,128) reduce in JAX

    if rows_k * LANES < f:
        # Sub-pack row / lane remainder (< pack*128 elems per sample): plain JAX.
        tail = g2[:, rows_k * LANES:].astype(jnp.float32)
        sumsq = sumsq + jnp.sum(tail * tail, axis=1)
    return sumsq


def gradient_penalty_from_grad(grad_interp):
    """((||grad_b||_2 - 1)^2).mean() given the already-computed gradient."""
    sumsq = _per_sample_sumsq(grad_interp)
    norm = jnp.sqrt(sumsq)
    return jnp.mean((norm - 1.0) ** 2)


def gradient_penalty_loss(critic_fn, interp):
    """Forward pass of GradientPenaltyLoss (grad_outputs = ones)."""
    # TODO(synk): torch.autograd.grad over the external critic graph has no
    # in-kernel Pallas equivalent; the all-ones-cotangent VJP is taken with
    # jax.grad here, and only the per-sample norm/penalty reduction runs in
    # the Pallas kernel.
    grad_interp = jax.grad(lambda x: jnp.sum(critic_fn(x)))(interp)
    return gradient_penalty_from_grad(grad_interp)


if __name__ == "__main__":
    key = jax.random.PRNGKey(0)
    k1, k2, k3, k4 = jax.random.split(key, 4)

    # --- GradientPenaltyLoss.forward at small shapes ---------------------------
    B, C, H, W = 2, 4, 16, 16
    interp = jax.random.normal(k1, (B, C, H, W), dtype=jnp.float32)
    Wm = jax.random.normal(k2, (C * H * W, 8), dtype=jnp.float32) * 0.02

    def critic_fn(x):
        h = x.reshape(x.shape[0], -1) @ Wm
        return jnp.sum(jnp.tanh(h), axis=-1)      # per-sample scalar critic

    loss = gradient_penalty_loss(critic_fn, interp)
    jax.block_until_ready(loss)

    # Reference: pure-JAX implementation of the same forward pass.
    grad_ref = jax.grad(lambda x: jnp.sum(critic_fn(x)))(interp)
    g = grad_ref.reshape(B, -1).astype(jnp.float32)
    ref = jnp.mean((jnp.sqrt(jnp.sum(g * g, axis=1)) - 1.0) ** 2)
    assert jnp.allclose(loss, ref, rtol=1e-5, atol=1e-5), (loss, ref)

    # --- Extra coverage of the reduction kernel itself -------------------------
    # Multi-chunk f32 path (rows = 200: 3 full 64-row chunks + 8-row remainder).
    ga = jax.random.normal(k3, (2, 2, 100, 128), dtype=jnp.float32)
    ra = gradient_penalty_from_grad(ga)
    ga2 = ga.reshape(2, -1)
    ra_ref = jnp.mean((jnp.sqrt(jnp.sum(ga2 * ga2, axis=1)) - 1.0) ** 2)
    assert jnp.allclose(ra, ra_ref, rtol=1e-5, atol=1e-5), (ra, ra_ref)

    # Native bf16 streaming path (halves HBM bytes; cast happens in-kernel).
    gb = (jax.random.normal(k4, (2, 256, 128), dtype=jnp.float32) * 0.05
          ).astype(jnp.bfloat16)
    rb = gradient_penalty_from_grad(gb)
    gb2 = gb.astype(jnp.float32).reshape(2, -1)
    rb_ref = jnp.mean((jnp.sqrt(jnp.sum(gb2 * gb2, axis=1)) - 1.0) ** 2)
    assert jnp.allclose(rb, rb_ref, rtol=1e-4, atol=1e-4), (rb, rb_ref)

    jax.block_until_ready((ra, rb))
    print("KERNEL_OK")
</pallas_src>

<mosaic_0001>
module attributes {stable_mosaic.version = 11 : i64} {
  func.func @_sumsq_kernel(%arg0: i32, %arg1: i32, %arg2: i32, %arg3: memref<1x8x128xf32, #tpu.memory_space<vmem>>, %arg4: memref<1x1x8x128xf32, #tpu.memory_space<vmem>>) attributes {dimension_semantics = [#tpu.dimension_semantics<parallel>, #tpu.dimension_semantics<parallel>, #tpu.dimension_semantics<arbitrary>], iteration_bounds = array<i64: 2, 1, 1>, scalar_prefetch = 0 : i64, scratch_operands = 0 : i64, tpu.core_type = #tpu.core_type<tc>, window_params = [{transform_indices = @transform_0, window_bounds = array<i64: 1, 8, 128>}, {transform_indices = @transform_1, window_bounds = array<i64: 1, 1, 8, 128>}]} {
    %c0_i32 = arith.constant 0 : i32
    %0 = arith.cmpi eq, %arg2, %c0_i32 : i32
    %1 = arith.extui %0 : i1 to i32
    %c0_i32_0 = arith.constant 0 : i32
    %2 = arith.cmpi ne, %1, %c0_i32_0 : i32
    scf.if %2 {
      %cst_12 = arith.constant 0.000000e+00 : f32
      %14 = vector.broadcast %cst_12 : f32 to vector<1x1x8x128xf32>
      %c0_13 = arith.constant 0 : index
      %c0_14 = arith.constant 0 : index
      %c0_15 = arith.constant 0 : index
      %c0_16 = arith.constant 0 : index
      %15 = vector.load %arg4[%c0_13, %c0_14, %c0_15, %c0_16] : memref<1x1x8x128xf32, #tpu.memory_space<vmem>>, vector<1x1x8x128xf32>
      tpu.vector_store %arg4[%c0_13, %c0_14, %c0_15, %c0_16], %14 {strides = array<i32>} : memref<1x1x8x128xf32, #tpu.memory_space<vmem>>, vector<1x1x8x128xf32>,
    } else {
    }
    %cst = arith.constant 0.000000e+00 : f32
    %3 = vector.broadcast %cst : f32 to vector<8x128xf32>
    %c0 = arith.constant 0 : index
    %c0_1 = arith.constant 0 : index
    %c0_2 = arith.constant 0 : index
    %4 = vector.load %arg3[%c0, %c0_1, %c0_2] : memref<1x8x128xf32, #tpu.memory_space<vmem>>, vector<1x8x128xf32>
    %5 = vector.shape_cast %4 : vector<1x8x128xf32> to vector<8x128xf32>
    %6 = arith.mulf %5, %5 : vector<8x128xf32>
    %7 = vector.shape_cast %6 : vector<8x128xf32> to vector<1x8x128xf32>
    %cst_3 = arith.constant dense<0.000000e+00> : vector<8x128xf32>
    %8 = vector.multi_reduction <add>, %7, %cst_3 [0] : vector<1x8x128xf32> to vector<8x128xf32>
    %9 = arith.addf %3, %8 : vector<8x128xf32>
    %c0_4 = arith.constant 0 : index
    %c0_5 = arith.constant 0 : index
    %c0_6 = arith.constant 0 : index
    %c0_7 = arith.constant 0 : index
    %10 = vector.load %arg4[%c0_4, %c0_5, %c0_6, %c0_7] : memref<1x1x8x128xf32, #tpu.memory_space<vmem>>, vector<1x1x8x128xf32>
    %11 = vector.shape_cast %9 : vector<8x128xf32> to vector<1x1x8x128xf32>
    %12 = arith.addf %10, %11 : vector<1x1x8x128xf32>
    %c0_8 = arith.constant 0 : index
    %c0_9 = arith.constant 0 : index
    %c0_10 = arith.constant 0 : index
    %c0_11 = arith.constant 0 : index
    %13 = vector.load %arg4[%c0_8, %c0_9, %c0_10, %c0_11] : memref<1x1x8x128xf32, #tpu.memory_space<vmem>>, vector<1x1x8x128xf32>
    tpu.vector_store %arg4[%c0_8, %c0_9, %c0_10, %c0_11], %12 {strides = array<i32>} : memref<1x1x8x128xf32, #tpu.memory_space<vmem>>, vector<1x1x8x128xf32>,
    return
  }
  func.func @transform_0(%arg0: i32, %arg1: i32, %arg2: i32) -> (i32, i32, i32) {
    %c1_i32 = arith.constant 1 : i32
    %0 = arith.muli %arg1, %c1_i32 : i32
    %1 = arith.addi %0, %arg2 : i32
    %c0_i32 = arith.constant 0 : i32
    %c0_i32_0 = arith.constant 0 : i32
    return %arg0, %1, %c0_i32 : i32, i32, i32
  }
  func.func @transform_1(%arg0: i32, %arg1: i32, %arg2: i32) -> (i32, i32, i32, i32) {
    %c0_i32 = arith.constant 0 : i32
    %c0_i32_0 = arith.constant 0 : i32
    %c0_i32_1 = arith.constant 0 : i32
    return %arg0, %arg1, %c0_i32, %c0_i32_0 : i32, i32, i32, i32
  }
}

</mosaic_0001>

<bundles_post_ra>
// kernel: tpu_custom_call.1
= control target key start
LH: loop header
LB: loop body
LE: loop exit
PB: predicated region body
PF: predicated region fallthrough
CT: control target
= control target key end

     0   :  { %6 = vsyncpa [#allocation3], 0  ;;  %s645_s0 = inlined_call_operand.hbm [shape: f32[2,8,128], index: 0, kind: input, shape index: {}]   ;;  %s646_s1 = inlined_call_operand.hbm [shape: f32[2,1,8,128], index: 1, kind: output, shape index: {}]  }
   0x1   :  { %8 = vsyncpa [#allocation3 + $0x1], 0 }
   0x2   :  { %9 = vsyncpa [#allocation4], 0 }
   0x3   :  { %11 = vsyncpa [#allocation4 + $0x1], 0  ;;  %s473_s6 = smov 0   ;;  %s475_s7 = smov 0  }
   0x4   :  { %s477_s8 = smov 0   ;;  %s479_s9 = smov 0  }
   0x5   :  { %s481_s10 = smov 0   ;;  %s483_s11 = smov 0  }
   0x6 LB: > { %s271_s12 = sadd.s32 4294967295, %s459_s11   ;;  %s272_s13 = sadd.s32 4294967294, %s459_s11   ;;  %s459_s11 = sphi %s483_s11, %s17_s11   ;;  %s455_s10 = sphi %s481_s10, %s662_s10   ;;  %s451_s9 = sphi %s479_s9, %s661_s9   ;;  %s447_s8 = sphi %s477_s8, %s660_s8   ;;  %s443_s7 = sphi %s475_s7, %s659_s7   ;;  %s439_s6 = sphi %s473_s6, %s658_s6  }
   0x7   : > { %s36_s14 = sadd.s32 1, %s455_s10  ;;  %s47_s15 = sadd.s32 1, %s447_s8 }
   0x8   : > { %p38_p0 = scmp.ge.s32.totalorder %s36_s14, 2  ;;  %p54_p1 = scmp.ne.s32.totalorder %s447_s8, %s443_s7 }
   0x9   : > { %p55_p2 = scmp.eq.s32.totalorder %s459_s11, 0  ;;  %p60_p3 = scmp.ne.s32.totalorder %s443_s7, %s439_s6 }
   0xa   : > { %s664_s14 = smov (%p38_p0, %s36_s14), 0  ;;  %p61_p5 = scmp.eq.s32.totalorder %s271_s12, 0 }
   0xb   : > { %p514_p4 = por %p55_p2, %p54_p1  ;;  %s42_s17 = ssub.s32 %s455_s10, %s664_s14 }
   0xc   : > { %p86_p6 = scmp.eq.s32.totalorder %s271_s12, 1  ;;  %p45_p7 = scmp.eq.s32.totalorder %s42_s17, 0 }
   0xd   : > { %p520_p8 = por %p61_p5, %p60_p3  ;;  %p92_p10 = scmp.eq.s32.totalorder %s272_s13, 1 }
   0xe   : > { %p524_p9 = por %p86_p6, %p54_p1  ;;  %p296_p13 = scmp.lt.s32.totalorder %s459_s11, 2 }
   0xf   : > { %s529_s20 = scalar_select %p45_p7, %s447_s8, %s47_s15  }
  0x10   : > { %s650_s19 = scalar_select %p524_p9, 1, 0 }
  0x11   : > { %p531_p11 = por %p92_p10, %p60_p3  ;;  %s112_s22 = sand.u32 1, %s447_s8  }
  0x12   : > { %s275_s23 = sshll.u32 %s112_s22, 3  ;;  %s276_s24 = sshll.u32 %s455_s10, 7 }
  0x13   : > { %s651_s21 = scalar_select %p531_p11, 1, 0 }
  0x14   : > { %s542_s27 = scalar_lea.hbm %s645_s0, %s276_s24  ;;  %s116_s28 = scalar_lea.vmem [#allocation2], %s275_s23 }
  0x15   : > { %s125_s29 = sshll.u32 %s116_s28, 4  ;;  %p548_p0 = pnand %p296_p13, %p514_p4  ;;  %s544_s29 = int_to_ptr.vmem [resolvable:$true] %s125_s29 }
  0x16   : > { %s113_s2 = scalar_lea.sflag [#allocation3], %s112_s22  ;;  %s347_s3 = scalar_lea.hbm %s542_s27, 128 }
  0x17   : > { %p348_p3 = scmp.ne.s32.totalorder %s542_s27, %s347_s3  ;;  %p349_p5 = pneg %p548_p0 }
  0x18   : > { %s352_s12 = scalar_lea.hbm %s645_s0, 256  ;;  %p353_p4 = scmp.lt.u32.totalorder %s542_s27, %s645_s0 }
  0x19   : > { %p350_p6 = pnand %p349_p5, %p348_p3  ;;  %p354_p10 = scmp.lt.u32.totalorder %s352_s12, %s347_s3 }
  0x1a   : > { %p356_p12 = scmp.lt.u32.totalorder %s347_s3, %s542_s27 }
  0x1b   : > { %p351_p7 = pneg %p350_p6  ;;  %p355_p13 = por %p354_p10, %p353_p4 }
  0x1d   : > { %p357_p1 = por %p356_p12, %p355_p13 }
  0x1f   : > { %p358_p2 = pnand %p357_p1, %p351_p7 }
  0x21   : > { %361 = shalt.err (!%p358_p2)
}
  0x22   : > { %s362_s16 = scalar_lea.vmem %s544_s29, 128  ;;  %s461_s17 = smov [#allocation2]  }
  0x23   : > { %p363_p3 = scmp.ne.s32.totalorder %s544_s29, %s362_s16  ;;  %s367_s22 = sshll.u32 %s461_s17, 4  ;;  %s368_s22 = int_to_ptr.vmem [resolvable:$false] %s367_s22 }
  0x24   : > { %s369_s23 = scalar_lea.vmem %s368_s22, 256  ;;  %p370_p9 = scmp.lt.s32.totalorder %s544_s29, %s368_s22 }
  0x25   : > { %p365_p6 = pnand %p363_p3, %p349_p5  ;;  %p371_p4 = scmp.lt.s32.totalorder %s369_s23, %s362_s16 }
  0x27   : > { %p366_p11 = pneg %p365_p6  ;;  %p372_p10 = por %p371_p4, %p370_p9 }
  0x29   : > { %p373_p12 = pnand %p372_p10, %p366_p11 }
  0x2b   : > { %376 = shalt.err (!%p373_p12)
}
  0x2c   : > { %291 = dma.hbm_to_vmem [thread:$0]  (!%p548_p0), %s542_s27, 128, %s544_s29, %s113_s2  }
  0x2d   : > { %p653_p1 = scmp.lt.s32.totalorder %s459_s11, 3  ;;  %p654_p2 = scmp.ge.s32.totalorder %s459_s11, 1 }
  0x2f   : > { %p131_p5 = pnand %p654_p2, %p653_p1 }
  0x30   : > { %s584_s24 = sand.u32 (!%p131_p5), 1, %s443_s7  }
  0x31   : > { %134 = sbr.rel (%p131_p5) target bundleno = 83 (0x53), region = 24  ;;  %s278_s25 = sshll.u32 (!%p131_p5), %s584_s24, 3 }
  0x32   : > { %s137_s26 = scalar_lea.sflag (!%p131_p5), [#allocation3], %s584_s24  ;;  %s140_s28 = scalar_lea.vmem (!%p131_p5), [#allocation2], %s278_s25 }
  0x38   : > { %430 = dma.done.wait (%p520_p8), %s137_s26, 128  }
  0x39   : > { %432 = vsyncadd (%p520_p8), %s137_s26, 4294967168  ;;  %v165_v0 = vld [vmem:[%s140_s28] sm:$0xff]  ;;  %s281_s27 = sshll.u32 %s451_s9, 7  ;;  %s158_s29 = scalar_lea.vmem [#allocation5], %s278_s25 }
  0x3a   : > { %s187_s30 = sshll.u32 %s158_s29, 4  ;;  %v166_v1 = vmul.f32 %v165_v0, %v165_v0  ;;  %s596_s4 = scalar_lea.hbm %s646_s1, %s281_s27  ;;  %s598_s30 = int_to_ptr.vmem [resolvable:$true] %s187_s30 }
  0x3b   : > { %s173_s18 = scalar_lea.sflag [#allocation4], %s584_s24  ;;  %s377_s5 = scalar_lea.vmem %s598_s30, 128 }
  0x3c   : > { %171 = vst [vmem:[%s158_s29] sm:$0xff] %v166_v1  ;;  %p378_p8 = scmp.ne.s32.totalorder %s598_s30, %s377_s5  ;;  %p655_p9 = scmp.ne.s32.totalorder %s650_s19, 0 }
  0x3d   : > { %s462_s9 = smov [#allocation5]  }
  0x3e   : > { %p379_p11 = pnand %p378_p8, %p655_p9  ;;  %s381_s12 = sshll.u32 %s462_s9, 4  ;;  %s382_s12 = int_to_ptr.vmem [resolvable:$false] %s381_s12 }
  0x3f   : > { %s383_s13 = scalar_lea.vmem %s382_s12, 256  ;;  %p384_p7 = scmp.lt.s32.totalorder %s598_s30, %s382_s12 }
  0x40   : > { %p380_p0 = pneg %p379_p11  ;;  %p385_p13 = scmp.lt.s32.totalorder %s383_s13, %s377_s5 }
  0x42   : > { %p386_p3 = por %p385_p13, %p384_p7 }
  0x44   : > { %p387_p6 = pnand %p386_p3, %p380_p0 }
  0x46   : > { %390 = shalt.err (!%p387_p6)
}
  0x47   : > { %s391_s15 = scalar_lea.hbm %s596_s4, 128  ;;  %s395_s22 = scalar_lea.hbm %s646_s1, 256 }
  0x48   : > { %p392_p4 = scmp.ne.s32.totalorder %s596_s4, %s391_s15  ;;  %p396_p1 = scmp.lt.u32.totalorder %s596_s4, %s646_s1 }
  0x49   : > { %p397_p2 = scmp.lt.u32.totalorder %s395_s22, %s391_s15  ;;  %p399_p8 = scmp.lt.u32.totalorder %s391_s15, %s596_s4 }
  0x4a   : > { %p393_p10 = pnand %p392_p4, %p655_p9 }
  0x4b   : > { %p398_p5 = por %p397_p2, %p396_p1 }
  0x4c   : > { %p394_p12 = pneg %p393_p10 }
  0x4d   : > { %p400_p11 = por %p399_p8, %p398_p5 }
  0x4f   : > { %p401_p0 = pnand %p400_p11, %p394_p12 }
  0x51   : > { %404 = shalt.err (!%p401_p0)
}
  0x52   : > { %286 = dma.vmem_to_hbm [thread:$0]  (%p655_p9), %s598_s30, 128, %s596_s4, %s173_s18  }
  0x53 PF: > { %s199_s25 = sand.u32 1, %s439_s6   ;;  %p656_p7 = scmp.ne.s32.totalorder %s651_s21, 0 }
  0x54   : > { %p657_p13 = scmp.ge.s32.totalorder %s459_s11, 2  ;;  %s200_s26 = scalar_lea.sflag [#allocation4], %s199_s25 }
  0x56   : > { %p293_p3 = pnand %p657_p13, %p656_p7 }
  0x58   : > { %434 = dma.done.wait (!%p293_p3), %s200_s26, 128  }
  0x59   : > { %436 = vsyncadd (!%p293_p3), %s200_s26, 4294967168  ;;  %s17_s11 = sadd.s32 1, %s459_s11   ;;  %s658_s6 = smov %s443_s7 }
  0x5a   : > { %p14_p6 = scmp.ge.s32.totalorder %s17_s11, 4   ;;  %s659_s7 = smov %s447_s8 }
  0x5b   : > { %s660_s8 = smov %s529_s20  ;;  %s661_s9 = smov %s455_s10 }
  0x5c   : > { %s662_s10 = smov %s664_s14  ;;  %16 = sbr.rel (!%p14_p6) target bundleno = 6 (0x6), region = 73 }
  0x63   :  { %205 = vsyncpa [#allocation3], 1 }
  0x64   :  { %207 = vsyncpa [#allocation3 + $0x1], 1 }
  0x65   :  { %208 = vsyncpa [#allocation4], 1 }
  0x66   :  { %210 = vsyncpa [#allocation4 + $0x1], 1 }

</bundles_post_ra>
